<compile_context>
chip_gen: v6e
topology: v6e:2x2x1
jax: 0.10.0
libtpu: 0.0.40
codegen_flags: <defaults>
</compile_context>

<pallas_src>
from functools import partial

import jax
import jax.numpy as jnp
from jax.experimental import pallas as pl
from jax.experimental.pallas import tpu as pltpu


# ----------------------------------------------------------------------------
# kernel: one grid step = `bb` images
# ----------------------------------------------------------------------------
def _zero_conv2d_kernel(W, bb, x_ref, w_ref, mask_ref, off_ref, o_ref):
    """x_ref:    (bb, Cin_pad, H*W)   activations, spatial (H*W) on lanes
       w_ref:    (Cout, 9*Cin_pad)    packed conv weight, exp(3*scale) folded in
       mask_ref: (8, H*W)             validity of the 8 off-center taps (0/1)
       off_ref:  (Cout, H*W) f32      (pad-value-1 border + bias) * exp(3*scale)
       o_ref:    (bb, Cout, H*W)
    """
    cin_pad = x_ref.shape[1]
    HW = x_ref.shape[2]

    # Resident blocks (constant index_map) -> loaded once, reused every step.
    w = w_ref[...]                                    # (Cout, 9*Cin_pad)
    mask = mask_ref[...]                              # (8, HW)
    off = off_ref[...]                                # (Cout, HW), f32
    mask_rows = [mask[k:k + 1, :] for k in range(8)]  # hoisted static slices

    for i in range(bb):                               # static unroll over images
        x = x_ref[i]                                  # (Cin_pad, HW), lane-dense
        taps = []
        mi = 0
        for dy in range(3):
            for dx in range(3):
                if dy == 1 and dx == 1:               # center tap never sees pad
                    taps.append(x)
                    continue
                s = (dy - 1) * W + (dx - 1)
                rolled = pltpu.roll(x, shift=(-s) % HW, axis=1)   # XLU slot
                taps.append(rolled * mask_rows[mi])   # zero out the pad taps
                mi += 1
        # Cin_pad is a sublane multiple -> aligned stacking, no relayout.
        im2col = jnp.concatenate(taps, axis=0)        # (9*Cin_pad, HW)
        acc = jnp.dot(w, im2col, preferred_element_type=jnp.float32)
        # Pad-value-1 border + bias + exp(3*scale) are all inside `off`/`w`.
        o_ref[i] = (acc + off).astype(o_ref.dtype)    # lane-dense store


# ----------------------------------------------------------------------------
# wrapper
# ----------------------------------------------------------------------------
def zero_conv2d(x, weight, bias, scale):
    """ZeroConv2d forward.
    x: (B, Cin, H, W) NCHW; weight: (Cout, Cin, 3, 3) OIHW; bias: (Cout,);
    scale: (1, Cout, 1, 1).  Returns (B, Cout, H, W) in x.dtype."""
    B, Cin, H, W = x.shape
    Cout = weight.shape[0]
    HW = H * W
    dtype = x.dtype

    # ---- host-side parameter folding (one-time, O(Cout*HW)) ----------------
    # Pad Cin to a sublane multiple so in-kernel tap chunks stack vreg-aligned.
    sub = (8 * 4) // jnp.dtype(dtype).itemsize        # 8 for f32, 16 for bf16
    cin_pad = -(-Cin // sub) * sub

    e = jnp.exp(3.0 * scale.reshape(Cout).astype(jnp.float32))          # (Cout,)

    # Packed weight (Cout, 9*Cin_pad): tap-major (dy,dx), channel-minor, *exp.
    wp = jnp.transpose(weight.astype(jnp.float32), (0, 2, 3, 1))        # (Cout,3,3,Cin)
    wp = jnp.pad(wp, ((0, 0), (0, 0), (0, 0), (0, cin_pad - Cin)))
    w_packed = (wp.reshape(Cout, 9 * cin_pad) * e[:, None]).astype(dtype)

    # Validity masks of the 8 off-center taps (1 = real pixel, 0 = F.pad pixel).
    pos = jnp.arange(HW, dtype=jnp.int32)
    hh, ww = pos // W, pos % W
    masks = []
    for dy in range(3):
        for dx in range(3):
            if dy == 1 and dx == 1:
                continue
            masks.append((hh + dy - 1 >= 0) & (hh + dy - 1 < H) &
                         (ww + dx - 1 >= 0) & (ww + dx - 1 < W))
    mask = jnp.stack(masks).astype(jnp.float32)                          # (8, HW)

    # Constant F.pad(value=1) border contribution, folded with bias and exp.
    wsum = weight.astype(jnp.float32).sum(axis=1)                        # (Cout,3,3)
    wsum_off = jnp.stack([wsum[:, dy, dx]
                          for dy in range(3) for dx in range(3)
                          if not (dy == 1 and dx == 1)], axis=1)         # (Cout, 8)
    border = wsum_off @ (1.0 - mask)                                     # (Cout, HW)
    offset = (border + bias.reshape(Cout, 1).astype(jnp.float32)) * e[:, None]

    # ---- activations: channel-pad + flatten spatial onto lanes -------------
    if cin_pad != Cin:
        x = jnp.pad(x, ((0, 0), (0, cin_pad - Cin), (0, 0), (0, 0)))
    x3 = x.reshape(B, cin_pad, HW)

    # ---- images per grid step -----------------------------------------------
    # Merge batch into wide lane-dense blocks (>= ~1024 lanes per step where
    # possible; per-step grid overhead ~0.35 us), keep the ~20x(Cin_pad*lanes)
    # f32 tap/im2col working set under ~16 MiB so it is safe on v7x's smaller
    # VMEM, and leave >= 2 blocks when there is enough work so v7x's two
    # TensorCores are both fed via the "parallel" grid axis.
    bytes_per_lane = 20 * cin_pad * 4
    max_bb = max(1, (16 << 20) // (bytes_per_lane * HW))
    bb = 1
    for cand in range(1, B + 1):
        if B % cand:
            continue
        if cand > max_bb:
            break
        bb = cand
        if cand * HW >= 1024 and B // cand >= 2:
            break
    nblocks = B // bb

    out3 = pl.pallas_call(
        partial(_zero_conv2d_kernel, W, bb),
        grid=(nblocks,),
        in_specs=[
            pl.BlockSpec((bb, cin_pad, HW), lambda i: (i, 0, 0)),
            pl.BlockSpec((Cout, 9 * cin_pad), lambda i: (0, 0)),
            pl.BlockSpec((8, HW), lambda i: (0, 0)),
            pl.BlockSpec((Cout, HW), lambda i: (0, 0)),
        ],
        out_specs=pl.BlockSpec((bb, Cout, HW), lambda i: (i, 0, 0)),
        out_shape=jax.ShapeDtypeStruct((B, Cout, HW), dtype),
        compiler_params=pltpu.CompilerParams(
            dimension_semantics=("parallel",),
            vmem_limit_bytes=32 * 1024 * 1024),
    )(x3, w_packed, mask.astype(dtype), offset)

    return out3.reshape(B, Cout, H, W)


# ----------------------------------------------------------------------------
# pure-JAX reference (for correctness check only)
# ----------------------------------------------------------------------------
def zero_conv2d_ref(x, weight, bias, scale):
    xp = jnp.pad(x, ((0, 0), (0, 0), (1, 1), (1, 1)), constant_values=1.0)
    out = jax.lax.conv_general_dilated(
        xp, weight, window_strides=(1, 1), padding="VALID",
        dimension_numbers=("NCHW", "OIHW", "NCHW"),
        precision=jax.lax.Precision.HIGHEST)
    out = out + bias[None, :, None, None]
    return out * jnp.exp(scale * 3.0)


# ----------------------------------------------------------------------------
if __name__ == "__main__":
    key = jax.random.PRNGKey(0)
    kx, kw, kb, ks, kx2, kw2, kb2, ks2 = jax.random.split(key, 8)

    # Shapes implied by the module: small NCHW batch.
    B, Cin, H, W = 2, 4, 16, 16
    Cout = 8
    x = jax.random.normal(kx, (B, Cin, H, W), jnp.float32)

    fwd = jax.jit(zero_conv2d)

    # 1) The module's actual init: weight/bias/scale all zero -> output is 0.
    w0 = jnp.zeros((Cout, Cin, 3, 3), jnp.float32)
    b0 = jnp.zeros((Cout,), jnp.float32)
    s0 = jnp.zeros((1, Cout, 1, 1), jnp.float32)
    out0 = fwd(x, w0, b0, s0)
    jax.block_until_ready(out0)
    assert out0.shape == (B, Cout, H, W)
    assert bool(jnp.all(out0 == 0.0))

    # 2) Arbitrary (trained) parameters: compare against a pure-JAX reference.
    weight = 0.05 * jax.random.normal(kw, (Cout, Cin, 3, 3), jnp.float32)
    bias = 0.05 * jax.random.normal(kb, (Cout,), jnp.float32)
    scale = 0.1 * jax.random.normal(ks, (1, Cout, 1, 1), jnp.float32)
    out = fwd(x, weight, bias, scale)
    jax.block_until_ready(out)
    ref = zero_conv2d_ref(x, weight, bias, scale)
    assert out.shape == ref.shape == (B, Cout, H, W)
    assert bool(jnp.all(jnp.isfinite(out)))
    assert bool(jnp.max(jnp.abs(out - ref)) < 1e-4)

    # 3) Non-square spatial + channel counts that are not sublane multiples
    #    (exercises the H != W shift math and the Cin/Cout padding paths).
    B2, Cin2, H2, W2, Cout2 = 3, 3, 8, 32, 5
    x2 = jax.random.normal(kx2, (B2, Cin2, H2, W2), jnp.float32)
    weight2 = 0.05 * jax.random.normal(kw2, (Cout2, Cin2, 3, 3), jnp.float32)
    bias2 = 0.05 * jax.random.normal(kb2, (Cout2,), jnp.float32)
    scale2 = 0.1 * jax.random.normal(ks2, (1, Cout2, 1, 1), jnp.float32)
    out2 = jax.jit(zero_conv2d)(x2, weight2, bias2, scale2)
    jax.block_until_ready(out2)
    ref2 = zero_conv2d_ref(x2, weight2, bias2, scale2)
    assert out2.shape == ref2.shape == (B2, Cout2, H2, W2)
    assert bool(jnp.max(jnp.abs(out2 - ref2)) < 1e-4)

    print("KERNEL_OK")
</pallas_src>

<mosaic_0001>
module attributes {stable_mosaic.version = 11 : i64} {
  func.func @_zero_conv2d_kernel(%arg0: i32, %arg1: memref<2x8x256xf32, #tpu.memory_space<vmem>>, %arg2: memref<8x72xf32, #tpu.memory_space<vmem>>, %arg3: memref<8x256xf32, #tpu.memory_space<vmem>>, %arg4: memref<8x256xf32, #tpu.memory_space<vmem>>, %arg5: memref<2x8x256xf32, #tpu.memory_space<vmem>>) attributes {dimension_semantics = [#tpu.dimension_semantics<parallel>], iteration_bounds = array<i64: 1>, scalar_prefetch = 0 : i64, scratch_operands = 0 : i64, tpu.core_type = #tpu.core_type<tc>, window_params = [{transform_indices = @transform_0, window_bounds = array<i64: 2, 8, 256>}, {pipeline_mode = #tpu.pipeline_mode<synchronous>, transform_indices = @transform_1, window_bounds = array<i64: 8, 72>}, {pipeline_mode = #tpu.pipeline_mode<synchronous>, transform_indices = @transform_2, window_bounds = array<i64: 8, 256>}, {pipeline_mode = #tpu.pipeline_mode<synchronous>, transform_indices = @transform_3, window_bounds = array<i64: 8, 256>}, {transform_indices = @transform_4, window_bounds = array<i64: 2, 8, 256>}]} {
    %c0 = arith.constant 0 : index
    %c0_0 = arith.constant 0 : index
    %0 = vector.load %arg2[%c0, %c0_0] : memref<8x72xf32, #tpu.memory_space<vmem>>, vector<8x72xf32>
    %c0_1 = arith.constant 0 : index
    %c0_2 = arith.constant 0 : index
    %1 = vector.load %arg3[%c0_1, %c0_2] : memref<8x256xf32, #tpu.memory_space<vmem>>, vector<8x256xf32>
    %c0_3 = arith.constant 0 : index
    %c0_4 = arith.constant 0 : index
    %2 = vector.load %arg4[%c0_3, %c0_4] : memref<8x256xf32, #tpu.memory_space<vmem>>, vector<8x256xf32>
    %3 = vector.extract_strided_slice %1 {offsets = [0, 0], sizes = [1, 256], strides = [1, 1]} : vector<8x256xf32> to vector<1x256xf32>
    %4 = vector.extract_strided_slice %1 {offsets = [1, 0], sizes = [1, 256], strides = [1, 1]} : vector<8x256xf32> to vector<1x256xf32>
    %5 = vector.extract_strided_slice %1 {offsets = [2, 0], sizes = [1, 256], strides = [1, 1]} : vector<8x256xf32> to vector<1x256xf32>
    %6 = vector.extract_strided_slice %1 {offsets = [3, 0], sizes = [1, 256], strides = [1, 1]} : vector<8x256xf32> to vector<1x256xf32>
    %7 = vector.extract_strided_slice %1 {offsets = [4, 0], sizes = [1, 256], strides = [1, 1]} : vector<8x256xf32> to vector<1x256xf32>
    %8 = vector.extract_strided_slice %1 {offsets = [5, 0], sizes = [1, 256], strides = [1, 1]} : vector<8x256xf32> to vector<1x256xf32>
    %9 = vector.extract_strided_slice %1 {offsets = [6, 0], sizes = [1, 256], strides = [1, 1]} : vector<8x256xf32> to vector<1x256xf32>
    %10 = vector.extract_strided_slice %1 {offsets = [7, 0], sizes = [1, 256], strides = [1, 1]} : vector<8x256xf32> to vector<1x256xf32>
    %c0_5 = arith.constant 0 : index
    %c0_6 = arith.constant 0 : index
    %c0_7 = arith.constant 0 : index
    %11 = vector.load %arg1[%c0_5, %c0_6, %c0_7] : memref<2x8x256xf32, #tpu.memory_space<vmem>>, vector<1x8x256xf32>
    %12 = vector.shape_cast %11 : vector<1x8x256xf32> to vector<8x256xf32>
    %c17_i32 = arith.constant 17 : i32
    %13 = tpu.dynamic_rotate %12 by %c17_i32 dim 1 : vector<8x256xf32>, i32 -> vector<8x256xf32>
    %14 = vector.broadcast %3 : vector<1x256xf32> to vector<8x256xf32>
    %15 = arith.mulf %13, %14 : vector<8x256xf32>
    %c16_i32 = arith.constant 16 : i32
    %16 = tpu.dynamic_rotate %12 by %c16_i32 dim 1 : vector<8x256xf32>, i32 -> vector<8x256xf32>
    %17 = vector.broadcast %4 : vector<1x256xf32> to vector<8x256xf32>
    %18 = arith.mulf %16, %17 : vector<8x256xf32>
    %c15_i32 = arith.constant 15 : i32
    %19 = tpu.dynamic_rotate %12 by %c15_i32 dim 1 : vector<8x256xf32>, i32 -> vector<8x256xf32>
    %20 = vector.broadcast %5 : vector<1x256xf32> to vector<8x256xf32>
    %21 = arith.mulf %19, %20 : vector<8x256xf32>
    %c1_i32 = arith.constant 1 : i32
    %22 = tpu.dynamic_rotate %12 by %c1_i32 dim 1 : vector<8x256xf32>, i32 -> vector<8x256xf32>
    %23 = vector.broadcast %6 : vector<1x256xf32> to vector<8x256xf32>
    %24 = arith.mulf %22, %23 : vector<8x256xf32>
    %c255_i32 = arith.constant 255 : i32
    %25 = tpu.dynamic_rotate %12 by %c255_i32 dim 1 : vector<8x256xf32>, i32 -> vector<8x256xf32>
    %26 = vector.broadcast %7 : vector<1x256xf32> to vector<8x256xf32>
    %27 = arith.mulf %25, %26 : vector<8x256xf32>
    %c241_i32 = arith.constant 241 : i32
    %28 = tpu.dynamic_rotate %12 by %c241_i32 dim 1 : vector<8x256xf32>, i32 -> vector<8x256xf32>
    %29 = vector.broadcast %8 : vector<1x256xf32> to vector<8x256xf32>
    %30 = arith.mulf %28, %29 : vector<8x256xf32>
    %c240_i32 = arith.constant 240 : i32
    %31 = tpu.dynamic_rotate %12 by %c240_i32 dim 1 : vector<8x256xf32>, i32 -> vector<8x256xf32>
    %32 = vector.broadcast %9 : vector<1x256xf32> to vector<8x256xf32>
    %33 = arith.mulf %31, %32 : vector<8x256xf32>
    %c239_i32 = arith.constant 239 : i32
    %34 = tpu.dynamic_rotate %12 by %c239_i32 dim 1 : vector<8x256xf32>, i32 -> vector<8x256xf32>
    %35 = vector.broadcast %10 : vector<1x256xf32> to vector<8x256xf32>
    %36 = arith.mulf %34, %35 : vector<8x256xf32>
    %37 = tpu.concatenate %15, %18, %21, %24, %12, %27, %30, %33, %36 in 0 : vector<8x256xf32>, vector<8x256xf32>, vector<8x256xf32>, vector<8x256xf32>, vector<8x256xf32>, vector<8x256xf32>, vector<8x256xf32>, vector<8x256xf32>, vector<8x256xf32> -> vector<72x256xf32>
    %cst = arith.constant dense<0.000000e+00> : vector<8x256xf32>
    %38 = tpu.matmul %0, %37, %cst {dimension_numbers = #tpu.dot_dimension_numbers<[1], [0], [0], [1], [0, 0, 1, 1], [], []>} : vector<8x72xf32>, vector<72x256xf32>, vector<8x256xf32> -> vector<8x256xf32>
    %39 = arith.addf %38, %2 : vector<8x256xf32>
    %c0_8 = arith.constant 0 : index
    %c0_9 = arith.constant 0 : index
    %c0_10 = arith.constant 0 : index
    %40 = vector.load %arg5[%c0_8, %c0_9, %c0_10] : memref<2x8x256xf32, #tpu.memory_space<vmem>>, vector<1x8x256xf32>
    %41 = vector.shape_cast %40 : vector<1x8x256xf32> to vector<8x256xf32>
    %42 = vector.shape_cast %39 : vector<8x256xf32> to vector<1x8x256xf32>
    tpu.vector_store %arg5[%c0_8, %c0_9, %c0_10], %42 {strides = array<i32>} : memref<2x8x256xf32, #tpu.memory_space<vmem>>, vector<1x8x256xf32>,
    %c1 = arith.constant 1 : index
    %c0_11 = arith.constant 0 : index
    %c0_12 = arith.constant 0 : index
    %43 = vector.load %arg1[%c1, %c0_11, %c0_12] : memref<2x8x256xf32, #tpu.memory_space<vmem>>, vector<1x8x256xf32>
    %44 = vector.shape_cast %43 : vector<1x8x256xf32> to vector<8x256xf32>
    %c17_i32_13 = arith.constant 17 : i32
    %45 = tpu.dynamic_rotate %44 by %c17_i32_13 dim 1 : vector<8x256xf32>, i32 -> vector<8x256xf32>
    %46 = vector.broadcast %3 : vector<1x256xf32> to vector<8x256xf32>
    %47 = arith.mulf %45, %46 : vector<8x256xf32>
    %c16_i32_14 = arith.constant 16 : i32
    %48 = tpu.dynamic_rotate %44 by %c16_i32_14 dim 1 : vector<8x256xf32>, i32 -> vector<8x256xf32>
    %49 = vector.broadcast %4 : vector<1x256xf32> to vector<8x256xf32>
    %50 = arith.mulf %48, %49 : vector<8x256xf32>
    %c15_i32_15 = arith.constant 15 : i32
    %51 = tpu.dynamic_rotate %44 by %c15_i32_15 dim 1 : vector<8x256xf32>, i32 -> vector<8x256xf32>
    %52 = vector.broadcast %5 : vector<1x256xf32> to vector<8x256xf32>
    %53 = arith.mulf %51, %52 : vector<8x256xf32>
    %c1_i32_16 = arith.constant 1 : i32
    %54 = tpu.dynamic_rotate %44 by %c1_i32_16 dim 1 : vector<8x256xf32>, i32 -> vector<8x256xf32>
    %55 = vector.broadcast %6 : vector<1x256xf32> to vector<8x256xf32>
    %56 = arith.mulf %54, %55 : vector<8x256xf32>
    %c255_i32_17 = arith.constant 255 : i32
    %57 = tpu.dynamic_rotate %44 by %c255_i32_17 dim 1 : vector<8x256xf32>, i32 -> vector<8x256xf32>
    %58 = vector.broadcast %7 : vector<1x256xf32> to vector<8x256xf32>
    %59 = arith.mulf %57, %58 : vector<8x256xf32>
    %c241_i32_18 = arith.constant 241 : i32
    %60 = tpu.dynamic_rotate %44 by %c241_i32_18 dim 1 : vector<8x256xf32>, i32 -> vector<8x256xf32>
    %61 = vector.broadcast %8 : vector<1x256xf32> to vector<8x256xf32>
    %62 = arith.mulf %60, %61 : vector<8x256xf32>
    %c240_i32_19 = arith.constant 240 : i32
    %63 = tpu.dynamic_rotate %44 by %c240_i32_19 dim 1 : vector<8x256xf32>, i32 -> vector<8x256xf32>
    %64 = vector.broadcast %9 : vector<1x256xf32> to vector<8x256xf32>
    %65 = arith.mulf %63, %64 : vector<8x256xf32>
    %c239_i32_20 = arith.constant 239 : i32
    %66 = tpu.dynamic_rotate %44 by %c239_i32_20 dim 1 : vector<8x256xf32>, i32 -> vector<8x256xf32>
    %67 = vector.broadcast %10 : vector<1x256xf32> to vector<8x256xf32>
    %68 = arith.mulf %66, %67 : vector<8x256xf32>
    %69 = tpu.concatenate %47, %50, %53, %56, %44, %59, %62, %65, %68 in 0 : vector<8x256xf32>, vector<8x256xf32>, vector<8x256xf32>, vector<8x256xf32>, vector<8x256xf32>, vector<8x256xf32>, vector<8x256xf32>, vector<8x256xf32>, vector<8x256xf32> -> vector<72x256xf32>
    %cst_21 = arith.constant dense<0.000000e+00> : vector<8x256xf32>
    %70 = tpu.matmul %0, %69, %cst_21 {dimension_numbers = #tpu.dot_dimension_numbers<[1], [0], [0], [1], [0, 0, 1, 1], [], []>} : vector<8x72xf32>, vector<72x256xf32>, vector<8x256xf32> -> vector<8x256xf32>
    %71 = arith.addf %70, %2 : vector<8x256xf32>
    %c1_22 = arith.constant 1 : index
    %c0_23 = arith.constant 0 : index
    %c0_24 = arith.constant 0 : index
    %72 = vector.load %arg5[%c1_22, %c0_23, %c0_24] : memref<2x8x256xf32, #tpu.memory_space<vmem>>, vector<1x8x256xf32>
    %73 = vector.shape_cast %72 : vector<1x8x256xf32> to vector<8x256xf32>
    %74 = vector.shape_cast %71 : vector<8x256xf32> to vector<1x8x256xf32>
    tpu.vector_store %arg5[%c1_22, %c0_23, %c0_24], %74 {strides = array<i32>} : memref<2x8x256xf32, #tpu.memory_space<vmem>>, vector<1x8x256xf32>,
    return
  }
  func.func @transform_0(%arg0: i32) -> (i32, i32, i32) {
    %c0_i32 = arith.constant 0 : i32
    %c0_i32_0 = arith.constant 0 : i32
    %c0_i32_1 = arith.constant 0 : i32
    return %arg0, %c0_i32, %c0_i32_0 : i32, i32, i32
  }
  func.func @transform_1(%arg0: i32) -> (i32, i32) {
    %c0_i32 = arith.constant 0 : i32
    %c0_i32_0 = arith.constant 0 : i32
    %c0_i32_1 = arith.constant 0 : i32
    return %c0_i32, %c0_i32_0 : i32, i32
  }
  func.func @transform_2(%arg0: i32) -> (i32, i32) {
    %c0_i32 = arith.constant 0 : i32
    %c0_i32_0 = arith.constant 0 : i32
    %c0_i32_1 = arith.constant 0 : i32
    return %c0_i32, %c0_i32_0 : i32, i32
  }
  func.func @transform_3(%arg0: i32) -> (i32, i32) {
    %c0_i32 = arith.constant 0 : i32
    %c0_i32_0 = arith.constant 0 : i32
    %c0_i32_1 = arith.constant 0 : i32
    return %c0_i32, %c0_i32_0 : i32, i32
  }
  func.func @transform_4(%arg0: i32) -> (i32, i32, i32) {
    %c0_i32 = arith.constant 0 : i32
    %c0_i32_0 = arith.constant 0 : i32
    %c0_i32_1 = arith.constant 0 : i32
    return %arg0, %c0_i32, %c0_i32_0 : i32, i32, i32
  }
}

</mosaic_0001>

<bundles_post_ra>
// kernel: zero_conv2d.1
= control target key start
LH: loop header
LB: loop body
LE: loop exit
PB: predicated region body
PF: predicated region fallthrough
CT: control target
= control target key end

     0   :  { %s399_s19 = smov 111   ;;  %s400_s24 = smov 112   ;;  %v406_v4 = vmov 0.0   ;;  %v28_v5 = vlaneseq  ;;  %vm162_vm8 = vcmask 588800   ;;  %s612_s0 = inlined_call_operand.vmem [shape: f32[2,8,256], index: 0, kind: input, shape index: {}]   ;;  %s613_s2 = inlined_call_operand.vmem [shape: f32[8,256], index: 2, kind: input, shape index: {}]   ;;  %s614_s1 = inlined_call_operand.vmem [shape: f32[8,72], index: 1, kind: input, shape index: {}]   ;;  %s615_s3 = inlined_call_operand.vmem [shape: f32[8,256], index: 3, kind: input, shape index: {}]   ;;  %s616_s4 = inlined_call_operand.vmem [shape: f32[2,8,256], index: 4, kind: output, shape index: {}]  }
   0x1   :  { %v436_v0 = vld [vmem:[%s612_s0 + $0x10] sm:$0xff]  ;;  %v441_v1 = vld [vmem:[%s612_s0] sm:$0xff]  ;;  %v448_v2 = vld [vmem:[%s612_s0 + $0x18] sm:$0xff]  ;;  %s401_s25 = smov 113   ;;  %s403_s26 = smov 1   ;;  %230 = vmatprep.mubr.f32.mxu0 %v406_v4  ;;  %370 = vmatprep.mubr.f32.mxu1 %v406_v4 }
   0x2   :  { %298 = vrot.lane.b32.xlu1 %v436_v0, %s399_s19  ;;  %145 = vrot.lane.b32.xlu0 %v441_v1, %s399_s19  ;;  %v453_v3 = vld [vmem:[%s612_s0 + $0x8] sm:$0xff]  ;;  %s402_s0 = smov 127   ;;  %s404_s27 = smov 15   ;;  %v485_v6 = vshrl.u32 %v28_v5, 7  ;;  %v487_v7 = vand.u32 127, %v28_v5  ;;  %v493_v9 = vld [vmem:[%s613_s2] sm:$0xff] }
   0x3   :  { %s405_s28 = smov 16   ;;  %s407_s29 = smov 17   ;;  %v498_v10 = vld [vmem:[%s613_s2 + $0x8] sm:$0xff] }
   0x4   :  { %v154_v8 = vsub.s32 7, %v485_v6  ;;  %v137_v13 = vsub.s32 6, %v485_v6  ;;  %vm149_vm0 = vcmp.lt.s32.totalorder %v487_v7, 111  ;;  %vm132_vm1 = vcmp.lt.s32.totalorder %v487_v7, 112 }
   0x5   :  { %v120_v34 = vsub.s32 5, %v485_v6  ;;  %vm115_vm2 = vcmp.lt.s32.totalorder %v487_v7, 113  ;;  %v103_v49 = vsub.s32 4, %v485_v6  ;;  %vm98_vm3 = vcmp.lt.s32.totalorder %v487_v7, 127 }
   0x6   :  { %300 = vrot.lane.b32.xlu1 %v448_v2, %s399_s19  ;;  %147 = vrot.lane.b32.xlu0 %v453_v3, %s399_s19  ;;  %v159_v14 = vrot.slane %v498_v10, %v154_v8  ;;  %v155_v15 = vrot.slane %v493_v9, %v154_v8  ;;  %v138_v18 = vrot.slane %v493_v9, %v137_v13  ;;  %v86_v4 = vsub.s32 3, %v485_v6 }
   0x7   :  { %v142_v19 = vrot.slane %v498_v10, %v137_v13  ;;  %v121_v41 = vrot.slane %v493_v9, %v120_v34  ;;  %v125_v42 = vrot.slane %v498_v10, %v120_v34  ;;  %v104_v56 = vrot.slane %v493_v9, %v103_v49 }
   0x8   :  { %v108_v57 = vrot.slane %v498_v10, %v103_v49  ;;  %vm81_vm4 = vcmp.lt.s32.totalorder %v487_v7, 1  ;;  %vm64_vm5 = vcmp.lt.s32.totalorder %v487_v7, 15  ;;  %v52_v34 = vsub.s32 1, %v485_v6 }
   0x9   :  { %vm47_vm6 = vcmp.lt.s32.totalorder %v487_v7, 16  ;;  %v35_v49 = vsub.s32 0, %v485_v6  ;;  %vm30_vm7 = vcmp.lt.s32.totalorder %v487_v7, 17 }
   0xa   :  { %130 = vrot.lane.b32.xlu1 %v453_v3, %s400_s24  ;;  %128 = vrot.lane.b32.xlu0 %v441_v1, %s400_s24 }
   0xe   :  { %292 = vrot.lane.b32.xlu1 %v448_v2, %s400_s24  ;;  %290 = vrot.lane.b32.xlu0 %v436_v0, %s400_s24 }
  0x12   :  { %113 = vrot.lane.b32.xlu1 %v453_v3, %s401_s25  ;;  %111 = vrot.lane.b32.xlu0 %v441_v1, %s401_s25 }
  0x16   :  { %284 = vrot.lane.b32.xlu1 %v448_v2, %s401_s25  ;;  %282 = vrot.lane.b32.xlu0 %v436_v0, %s401_s25 }
  0x1a   :  { %96 = vrot.lane.b32.xlu1 %v453_v3, %s402_s0  ;;  %94 = vrot.lane.b32.xlu0 %v441_v1, %s402_s0 }
  0x1e   :  { %276 = vrot.lane.b32.xlu1 %v448_v2, %s402_s0  ;;  %274 = vrot.lane.b32.xlu0 %v436_v0, %s402_s0 }
  0x22   :  { %79 = vrot.lane.b32.xlu1 %v453_v3, %s403_s26  ;;  %77 = vrot.lane.b32.xlu0 %v441_v1, %s403_s26 }
  0x26   :  { %268 = vrot.lane.b32.xlu1 %v448_v2, %s403_s26  ;;  %266 = vrot.lane.b32.xlu0 %v436_v0, %s403_s26 }
  0x2a   :  { %62 = vrot.lane.b32.xlu1 %v453_v3, %s404_s27  ;;  %60 = vrot.lane.b32.xlu0 %v441_v1, %s404_s27 }
  0x2e   :  { %260 = vrot.lane.b32.xlu1 %v448_v2, %s404_s27  ;;  %258 = vrot.lane.b32.xlu0 %v436_v0, %s404_s27 }
  0x32   :  { %45 = vrot.lane.b32.xlu1 %v453_v3, %s405_s28  ;;  %43 = vrot.lane.b32.xlu0 %v441_v1, %s405_s28 }
  0x36   :  { %252 = vrot.lane.b32.xlu1 %v448_v2, %s405_s28  ;;  %250 = vrot.lane.b32.xlu0 %v436_v0, %s405_s28 }
  0x3a   :  { %26 = vrot.lane.b32.xlu1 %v453_v3, %s407_s29  ;;  %24 = vrot.lane.b32.xlu0 %v441_v1, %s407_s29 }
  0x3e   :  { %244 = vrot.lane.b32.xlu1 %v448_v2, %s407_s29  ;;  %242 = vrot.lane.b32.xlu0 %v436_v0, %s407_s29 }
  0x74   :  { %v299_v11 = vpop.permute.xlu1 %298  ;;  %v146_v12 = vpop.permute.xlu0 %145 }
  0x78   :  { %v301_v16 = vpop.permute.xlu1 %300  ;;  %v148_v17 = vpop.permute.xlu0 %147 }
  0x79   :  { %v302_v20 = vsel %vm149_vm0, %v299_v11, %v301_v16  ;;  %v150_v21 = vsel %vm149_vm0, %v146_v12, %v148_v17  ;;  %v303_v22 = vsel %vm149_vm0, %v301_v16, %v299_v11  ;;  %v151_v23 = vsel %vm149_vm0, %v148_v17, %v146_v12 }
  0x7a   :  { %v305_v24 = vmul.f32 %v303_v22, %v159_v14  ;;  %v161_v25 = vmul.f32 %v159_v14, %v151_v23  ;;  %v160_v26 = vmul.f32 %v155_v15, %v150_v21  ;;  %v304_v27 = vmul.f32 %v302_v20, %v155_v15 }
  0x7b   :  { %v87_v15 = vrot.slane %v493_v9, %v86_v4  ;;  %v91_v16 = vrot.slane %v498_v10, %v86_v4  ;;  %v69_v23 = vsub.s32 2, %v485_v6 }
  0x7c   :  { %320 = vmatprep.subr.mxu1 %v305_v24  ;;  %v131_v28 = vpop.permute.xlu1 %130  ;;  %180 = vmatprep.subr.mxu0 %v161_v25  ;;  %v129_v29 = vpop.permute.xlu0 %128 }
  0x7d   :  { %v133_v30 = vsel %vm132_vm1, %v129_v29, %v131_v28  ;;  %v134_v31 = vsel %vm132_vm1, %v131_v28, %v129_v29  ;;  %181 = vmatpush1.msra.mxu0 %v160_v26  ;;  %321 = vmatpush1.msra.mxu1 %v304_v27  ;;  %v74_v28 = vrot.slane %v498_v10, %v69_v23 }
  0x7e   :  { %v143_v32 = vmul.f32 %v138_v18, %v133_v30  ;;  %v144_v33 = vmul.f32 %v142_v19, %v134_v31 }
  0x80   :  { %v293_v35 = vpop.permute.xlu1 %292  ;;  %182 = vmatprep.subr.mxu0 %v144_v33  ;;  %v291_v36 = vpop.permute.xlu0 %290 }
  0x81   :  { %v294_v37 = vsel %vm132_vm1, %v291_v36, %v293_v35  ;;  %v295_v38 = vsel %vm132_vm1, %v293_v35, %v291_v36  ;;  %183 = vmatpush1.msra.mxu0 %v143_v32 }
  0x82   :  { %v296_v39 = vmul.f32 %v294_v37, %v138_v18  ;;  %v297_v40 = vmul.f32 %v295_v38, %v142_v19 }
  0x84   :  { %v114_v43 = vpop.permute.xlu1 %113  ;;  %322 = vmatprep.subr.mxu1 %v297_v40  ;;  %v112_v44 = vpop.permute.xlu0 %111 }
  0x85   :  { %v116_v45 = vsel %vm115_vm2, %v112_v44, %v114_v43  ;;  %v117_v46 = vsel %vm115_vm2, %v114_v43, %v112_v44  ;;  %323 = vmatpush1.msra.mxu1 %v296_v39 }
  0x86   :  { %v126_v47 = vmul.f32 %v121_v41, %v116_v45  ;;  %v127_v48 = vmul.f32 %v125_v42, %v117_v46 }
  0x88   :  { %v285_v50 = vpop.permute.xlu1 %284  ;;  %184 = vmatprep.subr.mxu0 %v127_v48  ;;  %v283_v51 = vpop.permute.xlu0 %282 }
  0x89   :  { %v286_v52 = vsel %vm115_vm2, %v283_v51, %v285_v50  ;;  %v287_v53 = vsel %vm115_vm2, %v285_v50, %v283_v51  ;;  %185 = vmatpush1.msra.mxu0 %v126_v47 }
  0x8a   :  { %v288_v54 = vmul.f32 %v286_v52, %v121_v41  ;;  %v289_v55 = vmul.f32 %v287_v53, %v125_v42  ;;  %v53_v41 = vrot.slane %v493_v9, %v52_v34  ;;  %v57_v42 = vrot.slane %v498_v10, %v52_v34 }
  0x8c   :  { %v97_v58 = vpop.permute.xlu1 %96  ;;  %324 = vmatprep.subr.mxu1 %v289_v55  ;;  %v95_v59 = vpop.permute.xlu0 %94 }
  0x8d   :  { %v99_v60 = vsel %vm98_vm3, %v95_v59, %v97_v58  ;;  %v100_v61 = vsel %vm98_vm3, %v97_v58, %v95_v59  ;;  %325 = vmatpush1.msra.mxu1 %v288_v54 }
  0x8e   :  { %v109_v62 = vmul.f32 %v104_v56, %v99_v60  ;;  %v110_v63 = vmul.f32 %v108_v57, %v100_v61 }
  0x90   :  { %v277_v5 = vpop.permute.xlu1 %276  ;;  %186 = vmatprep.subr.mxu0 %v110_v63  ;;  %v275_v8 = vpop.permute.xlu0 %274  ;;  %v17_v63 = vld [vmem:[%s614_s1] sm:$0xff] }
  0x91   :  { %v278_v11 = vsel %vm98_vm3, %v275_v8, %v277_v5  ;;  %v279_v12 = vsel %vm98_vm3, %v277_v5, %v275_v8  ;;  %187 = vmatpush1.msra.mxu0 %v109_v62 }
  0x92   :  { %v280_v13 = vmul.f32 %v278_v11, %v104_v56  ;;  %v281_v14 = vmul.f32 %v279_v12, %v108_v57  ;;  %188 = vmatprep.subr.mxu0 %v453_v3  ;;  %v36_v56 = vrot.slane %v493_v9, %v35_v49  ;;  %v40_v57 = vrot.slane %v498_v10, %v35_v49  ;;  %v20_v12 = vld [vmem:[%s615_s3] sm:$0xff] }
  0x93   :  { %189 = vmatpush1.msra.mxu0 %v441_v1 }
  0x94   :  { %v80_v17 = vpop.permute.xlu1 %79  ;;  %326 = vmatprep.subr.mxu1 %v281_v14  ;;  %v78_v18 = vpop.permute.xlu0 %77  ;;  %v21_v14 = vld [vmem:[%s615_s3 + $0x8] sm:$0xff] }
  0x95   :  { %v82_v19 = vsel %vm81_vm4, %v78_v18, %v80_v17  ;;  %v83_v20 = vsel %vm81_vm4, %v80_v17, %v78_v18  ;;  %327 = vmatpush1.msra.mxu1 %v280_v13 }
  0x96   :  { %v92_v21 = vmul.f32 %v87_v15, %v83_v20  ;;  %v93_v22 = vmul.f32 %v91_v16, %v82_v19  ;;  %328 = vmatprep.subr.mxu1 %v448_v2  ;;  %v70_v2 = vrot.slane %v493_v9, %v69_v23 }
  0x97   :  { %329 = vmatpush1.msra.mxu1 %v436_v0 }
  0x98   :  { %v269_v3 = vpop.permute.xlu1 %268  ;;  %190 = vmatprep.subr.mxu0 %v93_v22  ;;  %v267_v1 = vpop.permute.xlu0 %266 }
  0x99   :  { %v270_v24 = vsel %vm81_vm4, %v267_v1, %v269_v3  ;;  %v271_v25 = vsel %vm81_vm4, %v269_v3, %v267_v1  ;;  %191 = vmatpush1.msra.mxu0 %v92_v21 }
  0x9a   :  { %v272_v26 = vmul.f32 %v271_v25, %v87_v15  ;;  %v273_v27 = vmul.f32 %v270_v24, %v91_v16 }
  0x9c   :  { %v63_v29 = vpop.permute.xlu1 %62  ;;  %330 = vmatprep.subr.mxu1 %v273_v27  ;;  %v61_v0 = vpop.permute.xlu0 %60 }
  0x9d   :  { %v65_v30 = vsel %vm64_vm5, %v61_v0, %v63_v29  ;;  %v66_v31 = vsel %vm64_vm5, %v63_v29, %v61_v0  ;;  %331 = vmatpush1.msra.mxu1 %v272_v26 }
  0x9e   :  { %v75_v32 = vmul.f32 %v70_v2, %v66_v31  ;;  %v76_v33 = vmul.f32 %v74_v28, %v65_v30 }
  0xa0   :  { %v261_v35 = vpop.permute.xlu1 %260  ;;  %192 = vmatprep.subr.mxu0 %v76_v33  ;;  %v259_v36 = vpop.permute.xlu0 %258 }
  0xa1   :  { %v262_v37 = vsel %vm64_vm5, %v259_v36, %v261_v35  ;;  %v263_v38 = vsel %vm64_vm5, %v261_v35, %v259_v36  ;;  %193 = vmatpush1.msra.mxu0 %v75_v32 }
  0xa2   :  { %v264_v39 = vmul.f32 %v263_v38, %v70_v2  ;;  %v265_v40 = vmul.f32 %v262_v37, %v74_v28 }
  0xa4   :  { %v46_v43 = vpop.permute.xlu1 %45  ;;  %332 = vmatprep.subr.mxu1 %v265_v40  ;;  %v44_v44 = vpop.permute.xlu0 %43 }
  0xa5   :  { %v48_v45 = vsel %vm47_vm6, %v44_v44, %v46_v43  ;;  %v49_v46 = vsel %vm47_vm6, %v46_v43, %v44_v44  ;;  %333 = vmatpush1.msra.mxu1 %v264_v39 }
  0xa6   :  { %v58_v47 = vmul.f32 %v53_v41, %v49_v46  ;;  %v59_v48 = vmul.f32 %v57_v42, %v48_v45 }
  0xa8   :  { %v253_v50 = vpop.permute.xlu1 %252  ;;  %194 = vmatprep.subr.mxu0 %v59_v48  ;;  %v251_v51 = vpop.permute.xlu0 %250 }
  0xa9   :  { %v254_v52 = vsel %vm47_vm6, %v251_v51, %v253_v50  ;;  %v255_v53 = vsel %vm47_vm6, %v253_v50, %v251_v51  ;;  %195 = vmatpush1.msra.mxu0 %v58_v47 }
  0xaa   :  { %v256_v54 = vmul.f32 %v255_v53, %v53_v41  ;;  %v257_v55 = vmul.f32 %v254_v52, %v57_v42 }
  0xac   :  { %v27_v58 = vpop.permute.xlu1 %26  ;;  %334 = vmatprep.subr.mxu1 %v257_v55  ;;  %v25_v6 = vpop.permute.xlu0 %24 }
  0xad   :  { %v31_v59 = vsel %vm30_vm7, %v25_v6, %v27_v58  ;;  %v32_v60 = vsel %vm30_vm7, %v27_v58, %v25_v6  ;;  %335 = vmatpush1.msra.mxu1 %v256_v54 }
  0xae   :  { %v41_v61 = vmul.f32 %v36_v56, %v32_v60  ;;  %v42_v62 = vmul.f32 %v40_v57, %v31_v59 }
  0xb0   :  { %v245_v9 = vpop.permute.xlu1 %244  ;;  %196 = vmatprep.subr.mxu0 %v42_v62  ;;  %v243_v10 = vpop.permute.xlu0 %242 }
  0xb1   :  { %v246_v4 = vsel %vm30_vm7, %v243_v10, %v245_v9  ;;  %v247_v5 = vsel %vm30_vm7, %v245_v9, %v243_v10  ;;  %197 = vmatpush1.msra.mxu0 %v41_v61 }
  0xb2   :  { %v248_v8 = vmul.f32 %v247_v5, %v36_v56  ;;  %v249_v11 = vmul.f32 %v246_v4, %v40_v57  ;;  %384 = vmatmul.mubr.msk.f32.vlgmr.msra.gmra.mxu0 %vm162_vm8, %v17_v63 }
  0xb4   :  { %336 = vmatprep.subr.mxu1 %v249_v11 }
  0xb5   :  { %337 = vmatpush1.msra.mxu1 %v248_v8 }
  0xb6   :  { %387 = vmatmul.mubr.msk.f32.vlgmr.msra.gmra.mxu1 %vm162_vm8, %v17_v63 }
 0x172   :  { %v232_v13 = vpop.f32.mrf.mxu0 }
 0x173   :  { %v233_v15 = vadd.f32 %v232_v13, %v20_v12 }
 0x174   :  { %v234_v16 = vpop.f32.mrf.mxu0 }
 0x175   :  { %237 = vst [vmem:[%s616_s4] sm:$0xff] %v233_v15  ;;  %v235_v7 = vadd.f32 %v234_v16, %v21_v14 }
 0x176   :  { %v372_v17 = vpop.f32.mrf.mxu1 }
 0x177   :  { %238 = vst [vmem:[%s616_s4 + $0x8] sm:$0xff] %v235_v7  ;;  %v373_v18 = vadd.f32 %v372_v17, %v20_v12 }
 0x178   :  { %v374_v19 = vpop.f32.mrf.mxu1 }
 0x179   :  { %388 = vst [vmem:[%s616_s4 + $0x10] sm:$0xff] %v373_v18  ;;  %v375_v20 = vadd.f32 %v374_v19, %v21_v14 }
 0x17b   :  { %389 = vst [vmem:[%s616_s4 + $0x18] sm:$0xff] %v375_v20 }

</bundles_post_ra>
